<compile_context>
chip_gen: v5e
topology: v5e:2x2
jax: 0.10.0
libtpu: 0.0.40
codegen_flags: <defaults>
</compile_context>

<pallas_src>
import numpy as np
import jax
import jax.numpy as jnp
from jax.experimental import pallas as pl
from jax.experimental.pallas import tpu as pltpu


# ------------------------------- Kernel --------------------------------------

def _make_encoder_kernel(B, T, N, D, H):
    """Returns the fused encoder kernel closed over the static problem sizes."""

    def kernel(xk_ref, wbd_ref, btile_ref, vtile_ref, gsum_ref, expand_ref,
               wih_ref, whh_ref, bl_ref, wfc_ref, bfc_ref,
               out_ref, hc_ref, hcat_ref):
        # ---------------- Spatial attention on the flat (T*B, K) layout ------
        xk = xk_ref[...]                                              # (T*B, K)
        h = jnp.tanh(jnp.dot(xk, wbd_ref[...],
                             preferred_element_type=jnp.float32)
                     + btile_ref[...])                                # (T*B, N*N)
        # Per-node V-weighted sum via a constant group-sum selector matmul.
        scores = jnp.dot(h * vtile_ref[...], gsum_ref[...],
                         preferred_element_type=jnp.float32)          # (T*B, N)
        m = jnp.max(scores, axis=-1, keepdims=True)
        e = jnp.exp(scores - m)
        attn = e * pl.reciprocal(jnp.sum(e, axis=-1, keepdims=True),
                                 approx=True)                         # softmax over nodes
        # Broadcast per-node attention over its D features (flat K layout).
        xw = xk * jnp.dot(attn, expand_ref[...],
                          preferred_element_type=jnp.float32)         # (T*B, K)

        # ---------------- LSTM ------------------------------------------------
        # i/f/o gate columns of wih/whh/b are pre-scaled by 0.5 on the host:
        # sigmoid(z) = 0.5*(1+tanh(z/2)) -> one EUP tanh per step for all gates.
        # Rows are already time-major, so this hoisted projection needs no perm.
        gx = jnp.dot(xw, wih_ref[...],
                     preferred_element_type=jnp.float32) + bl_ref[...]  # (T*B, 4H)

        # t = 0: h_0 = c_0 = 0 -> skip the recurrent matmul, c_1 = i*g.
        th = jnp.tanh(gx[0:B, :])
        i_g = 0.5 * (1.0 + th[:, 0:H])
        g_g = th[:, 2 * H:3 * H]
        o_g = 0.5 * (1.0 + th[:, 3 * H:4 * H])
        c_t = i_g * g_g
        h_t = o_g * jnp.tanh(c_t)
        out_ref[0:B, :] = h_t

        for t in range(1, T):                    # fully unrolled (static T)
            gates = gx[t * B:(t + 1) * B, :] + jnp.dot(
                h_t, whh_ref[...], preferred_element_type=jnp.float32)  # (B, 4H)
            th = jnp.tanh(gates)                 # single EUP op for all gates
            i_g = 0.5 * (1.0 + th[:, 0:H])
            f_g = 0.5 * (1.0 + th[:, H:2 * H])
            g_g = th[:, 2 * H:3 * H]
            o_g = 0.5 * (1.0 + th[:, 3 * H:4 * H])
            c_t = f_g * c_t + i_g * g_g
            h_t = o_g * jnp.tanh(c_t)
            out_ref[t * B:(t + 1) * B, :] = h_t  # one coalesced (B, H) store

        # hidden_fc fused over [h_T; c_T]: one matmul + one bias add.
        hcat_ref[0:B, :] = h_t
        hcat_ref[B:2 * B, :] = c_t
        hc_ref[...] = jnp.dot(hcat_ref[...], wfc_ref[...],
                              preferred_element_type=jnp.float32) + bfc_ref[...]

    return kernel


# ------------------------------- Wrapper --------------------------------------

@jax.jit
def encoder_forward(x, params):
    B, T, _, N, D = x.shape
    K = N * D
    H = params['w_hh'].shape[0]
    TB = T * B

    # Time-major flattened input (row = t*B + b): tiny XLA transpose (~KBs).
    xk_tm = x.reshape(B, T, K).transpose(1, 0, 2).reshape(TB, K)

    # Block-diagonal attention weight: wbd[n*D+d, n*N+m] = sa_w[d, m].
    eyeN = jnp.eye(N, dtype=jnp.float32)
    wbd = (eyeN[:, None, :, None]
           * params['sa_w'][None, :, None, :]).reshape(K, N * N)       # (K, N*N)
    btile = jnp.tile(params['sa_b'], N).reshape(1, N * N)              # (1, N*N)
    vtile = jnp.tile(params['sa_v'], N).reshape(1, N * N)              # (1, N*N)

    # Constant selectors (trace-time numpy): group-sum and attention broadcast.
    gsum = np.kron(np.eye(N, dtype=np.float32),
                   np.ones((N, 1), np.float32))                        # (N*N, N)
    expand = np.kron(np.eye(N, dtype=np.float32),
                     np.ones((1, D), np.float32))                      # (N, K)

    # Fold the 0.5 i/f/o gate scaling (sigmoid-via-tanh) into the weights.
    col = np.arange(4 * H)
    gscale = np.where((col >= 2 * H) & (col < 3 * H), 1.0, 0.5).astype(np.float32)
    wih_s = params['w_ih'] * gscale
    whh_s = params['w_hh'] * gscale
    b_s = params['b'] * gscale

    flops = 2 * (TB * K * N * N + TB * N * N * N + TB * N * K
                 + TB * K * 4 * H + (T - 1) * B * H * 4 * H
                 + 2 * B * H * N)
    transcendentals = TB * N * N + TB * N + TB + T * B * 5 * H
    bytes_accessed = 4 * (TB * K + K * N * N + 2 * N * N + N * N * N + N * K
                          + K * 4 * H + H * 4 * H + 4 * H + H * N + N
                          + TB * H + 2 * B * N)

    kernel = _make_encoder_kernel(B, T, N, D, H)
    out_tm, hc = pl.pallas_call(
        kernel,
        out_shape=(jax.ShapeDtypeStruct((TB, H), jnp.float32),
                   jax.ShapeDtypeStruct((2 * B, N), jnp.float32)),
        scratch_shapes=[pltpu.VMEM((2 * B, H), jnp.float32)],
        cost_estimate=pl.CostEstimate(flops=int(flops),
                                      transcendentals=int(transcendentals),
                                      bytes_accessed=int(bytes_accessed)),
    )(xk_tm, wbd, btile, vtile, gsum, expand,
      wih_s, whh_s, b_s, params['w_fc'], params['b_fc'])

    outputs = out_tm.reshape(T, B, H).transpose(1, 0, 2)   # (B, T, H), tiny transpose
    hidden = hc[:B][None]                                  # (1, B, N)
    cell = hc[B:][None]                                    # (1, B, N)
    return outputs, hidden, cell


# ---------------------- Deterministic parameter init -------------------------

def init_params(key, input_dim, hidden_dim, num_nodes):
    D, H, N = input_dim, hidden_dim, num_nodes
    K = N * D
    ks = jax.random.split(key, 8)
    s = 0.1
    return dict(
        sa_w=jax.random.normal(ks[0], (D, N), jnp.float32),          # SpatialAttentionLayer.W
        sa_b=jax.random.normal(ks[1], (N,), jnp.float32),            # SpatialAttentionLayer.b
        sa_v=jax.random.normal(ks[2], (N,), jnp.float32),            # SpatialAttentionLayer.V
        w_ih=s * jax.random.normal(ks[3], (K, 4 * H), jnp.float32),  # LSTM weight_ih (transposed)
        w_hh=s * jax.random.normal(ks[4], (H, 4 * H), jnp.float32),  # LSTM weight_hh (transposed)
        b=s * jax.random.normal(ks[5], (1, 4 * H), jnp.float32),     # bias_ih + bias_hh combined
        w_fc=s * jax.random.normal(ks[6], (H, N), jnp.float32),      # hidden_fc weight (transposed)
        b_fc=s * jax.random.normal(ks[7], (1, N), jnp.float32),      # hidden_fc bias
    )


# ---------------------------- Pure-JAX reference ------------------------------

def encoder_reference(x, params):
    B, T, _, N, D = x.shape
    H = params['w_hh'].shape[0]
    x3 = x.reshape(B * T, N, D)
    h = jnp.tanh(jnp.einsum('bnd,dm->bnm', x3, params['sa_w']) + params['sa_b'])
    scores = jnp.einsum('bnm,m->bn', h, params['sa_v'])
    attn = jax.nn.softmax(scores, axis=1)
    xw = x3 * attn[:, :, None]
    x_seq = xw.reshape(B, T, N * D)
    h_t = jnp.zeros((B, H), jnp.float32)
    c_t = jnp.zeros((B, H), jnp.float32)
    outs = []
    for t in range(T):
        gates = x_seq[:, t] @ params['w_ih'] + h_t @ params['w_hh'] + params['b']
        i = jax.nn.sigmoid(gates[:, :H])
        f = jax.nn.sigmoid(gates[:, H:2 * H])
        g = jnp.tanh(gates[:, 2 * H:3 * H])
        o = jax.nn.sigmoid(gates[:, 3 * H:])
        c_t = f * c_t + i * g
        h_t = o * jnp.tanh(c_t)
        outs.append(h_t)
    outputs = jnp.stack(outs, axis=1)
    hidden = (h_t @ params['w_fc'] + params['b_fc'])[None]
    cell = (c_t @ params['w_fc'] + params['b_fc'])[None]
    return outputs, hidden, cell


# --------------------------------- Main ---------------------------------------

if __name__ == "__main__":
    B, T, N, D, H = 2, 8, 8, 8, 32   # batch, seq, num_nodes, input_dim, hidden_dim
    key = jax.random.PRNGKey(0)
    kx, kp = jax.random.split(key)
    x = jax.random.normal(kx, (B, T, 1, N, D), jnp.float32)
    params = init_params(kp, D, H, N)

    outputs, hidden, cell = encoder_forward(x, params)
    jax.block_until_ready((outputs, hidden, cell))

    ro, rh, rc = encoder_reference(x, params)
    assert outputs.shape == (B, T, H)
    assert hidden.shape == (1, B, N) and cell.shape == (1, B, N)
    assert jnp.allclose(outputs, ro, atol=5e-2, rtol=5e-2)
    assert jnp.allclose(hidden, rh, atol=5e-2, rtol=5e-2)
    assert jnp.allclose(cell, rc, atol=5e-2, rtol=5e-2)

    print("KERNEL_OK")
</pallas_src>

<mosaic_0001>
module attributes {stable_mosaic.version = 11 : i64} {
  func.func @kernel(%arg0: memref<16x64xf32, #tpu.memory_space<vmem>>, %arg1: memref<64x64xf32, #tpu.memory_space<vmem>>, %arg2: memref<1x64xf32, #tpu.memory_space<vmem>>, %arg3: memref<1x64xf32, #tpu.memory_space<vmem>>, %arg4: memref<64x8xf32, #tpu.memory_space<vmem>>, %arg5: memref<8x64xf32, #tpu.memory_space<vmem>>, %arg6: memref<64x128xf32, #tpu.memory_space<vmem>>, %arg7: memref<32x128xf32, #tpu.memory_space<vmem>>, %arg8: memref<1x128xf32, #tpu.memory_space<vmem>>, %arg9: memref<32x8xf32, #tpu.memory_space<vmem>>, %arg10: memref<1x8xf32, #tpu.memory_space<vmem>>, %arg11: memref<16x32xf32, #tpu.memory_space<vmem>>, %arg12: memref<4x8xf32, #tpu.memory_space<vmem>>, %arg13: memref<4x32xf32, #tpu.memory_space<vmem>>) attributes {dimension_semantics = [], scalar_prefetch = 0 : i64, scratch_operands = 1 : i64, tpu.core_type = #tpu.core_type<tc>} {
    %c0 = arith.constant 0 : index
    %c0_0 = arith.constant 0 : index
    %0 = vector.load %arg0[%c0, %c0_0] : memref<16x64xf32, #tpu.memory_space<vmem>>, vector<16x64xf32>
    %c0_1 = arith.constant 0 : index
    %c0_2 = arith.constant 0 : index
    %1 = vector.load %arg1[%c0_1, %c0_2] : memref<64x64xf32, #tpu.memory_space<vmem>>, vector<64x64xf32>
    %cst = arith.constant dense<0.000000e+00> : vector<16x64xf32>
    %2 = tpu.matmul %0, %1, %cst {dimension_numbers = #tpu.dot_dimension_numbers<[1], [0], [0], [1], [0, 0, 1, 1], [], []>} : vector<16x64xf32>, vector<64x64xf32>, vector<16x64xf32> -> vector<16x64xf32>
    %c0_3 = arith.constant 0 : index
    %c0_4 = arith.constant 0 : index
    %3 = vector.load %arg2[%c0_3, %c0_4] : memref<1x64xf32, #tpu.memory_space<vmem>>, vector<1x64xf32>
    %4 = vector.broadcast %3 : vector<1x64xf32> to vector<16x64xf32>
    %5 = arith.addf %2, %4 : vector<16x64xf32>
    %6 = math.tanh %5 : vector<16x64xf32>
    %c0_5 = arith.constant 0 : index
    %c0_6 = arith.constant 0 : index
    %7 = vector.load %arg3[%c0_5, %c0_6] : memref<1x64xf32, #tpu.memory_space<vmem>>, vector<1x64xf32>
    %8 = vector.broadcast %7 : vector<1x64xf32> to vector<16x64xf32>
    %9 = arith.mulf %6, %8 : vector<16x64xf32>
    %c0_7 = arith.constant 0 : index
    %c0_8 = arith.constant 0 : index
    %10 = vector.load %arg4[%c0_7, %c0_8] : memref<64x8xf32, #tpu.memory_space<vmem>>, vector<64x8xf32>
    %cst_9 = arith.constant dense<0.000000e+00> : vector<16x8xf32>
    %11 = tpu.matmul %9, %10, %cst_9 {dimension_numbers = #tpu.dot_dimension_numbers<[1], [0], [0], [1], [0, 0, 1, 1], [], []>} : vector<16x64xf32>, vector<64x8xf32>, vector<16x8xf32> -> vector<16x8xf32>
    %cst_10 = arith.constant dense<0xFF800000> : vector<16xf32>
    %12 = vector.multi_reduction <maximumf>, %11, %cst_10 [1] : vector<16x8xf32> to vector<16xf32>
    %13 = vector.shape_cast %12 : vector<16xf32> to vector<16x1xf32>
    %14 = vector.broadcast %13 : vector<16x1xf32> to vector<16x8xf32>
    %15 = arith.subf %11, %14 : vector<16x8xf32>
    %16 = math.exp %15 : vector<16x8xf32>
    %cst_11 = arith.constant dense<0.000000e+00> : vector<16xf32>
    %17 = vector.multi_reduction <add>, %16, %cst_11 [1] : vector<16x8xf32> to vector<16xf32>
    %18 = vector.shape_cast %17 : vector<16xf32> to vector<16x1xf32>
    %19 = tpu.reciprocal %18 {approx = true} : vector<16x1xf32> -> vector<16x1xf32>
    %20 = vector.broadcast %19 : vector<16x1xf32> to vector<16x8xf32>
    %21 = arith.mulf %16, %20 : vector<16x8xf32>
    %c0_12 = arith.constant 0 : index
    %c0_13 = arith.constant 0 : index
    %22 = vector.load %arg5[%c0_12, %c0_13] : memref<8x64xf32, #tpu.memory_space<vmem>>, vector<8x64xf32>
    %cst_14 = arith.constant dense<0.000000e+00> : vector<16x64xf32>
    %23 = tpu.matmul %21, %22, %cst_14 {dimension_numbers = #tpu.dot_dimension_numbers<[1], [0], [0], [1], [0, 0, 1, 1], [], []>} : vector<16x8xf32>, vector<8x64xf32>, vector<16x64xf32> -> vector<16x64xf32>
    %24 = arith.mulf %0, %23 : vector<16x64xf32>
    %c0_15 = arith.constant 0 : index
    %c0_16 = arith.constant 0 : index
    %25 = vector.load %arg6[%c0_15, %c0_16] : memref<64x128xf32, #tpu.memory_space<vmem>>, vector<64x128xf32>
    %cst_17 = arith.constant dense<0.000000e+00> : vector<16x128xf32>
    %26 = tpu.matmul %24, %25, %cst_17 {dimension_numbers = #tpu.dot_dimension_numbers<[1], [0], [0], [1], [0, 0, 1, 1], [], []>} : vector<16x64xf32>, vector<64x128xf32>, vector<16x128xf32> -> vector<16x128xf32>
    %c0_18 = arith.constant 0 : index
    %c0_19 = arith.constant 0 : index
    %27 = vector.load %arg8[%c0_18, %c0_19] : memref<1x128xf32, #tpu.memory_space<vmem>>, vector<1x128xf32>
    %28 = vector.broadcast %27 : vector<1x128xf32> to vector<16x128xf32>
    %29 = arith.addf %26, %28 : vector<16x128xf32>
    %30 = vector.extract_strided_slice %29 {offsets = [0, 0], sizes = [2, 128], strides = [1, 1]} : vector<16x128xf32> to vector<2x128xf32>
    %31 = math.tanh %30 : vector<2x128xf32>
    %32 = vector.extract_strided_slice %31 {offsets = [0, 0], sizes = [2, 32], strides = [1, 1]} : vector<2x128xf32> to vector<2x32xf32>
    %cst_20 = arith.constant 1.000000e+00 : f32
    %33 = vector.broadcast %cst_20 : f32 to vector<2x32xf32>
    %34 = arith.addf %33, %32 : vector<2x32xf32>
    %cst_21 = arith.constant 5.000000e-01 : f32
    %35 = vector.broadcast %cst_21 : f32 to vector<2x32xf32>
    %36 = arith.mulf %35, %34 : vector<2x32xf32>
    %37 = vector.extract_strided_slice %31 {offsets = [0, 64], sizes = [2, 32], strides = [1, 1]} : vector<2x128xf32> to vector<2x32xf32>
    %38 = vector.extract_strided_slice %31 {offsets = [0, 96], sizes = [2, 32], strides = [1, 1]} : vector<2x128xf32> to vector<2x32xf32>
    %cst_22 = arith.constant 1.000000e+00 : f32
    %39 = vector.broadcast %cst_22 : f32 to vector<2x32xf32>
    %40 = arith.addf %39, %38 : vector<2x32xf32>
    %cst_23 = arith.constant 5.000000e-01 : f32
    %41 = vector.broadcast %cst_23 : f32 to vector<2x32xf32>
    %42 = arith.mulf %41, %40 : vector<2x32xf32>
    %43 = arith.mulf %36, %37 : vector<2x32xf32>
    %44 = math.tanh %43 : vector<2x32xf32>
    %45 = arith.mulf %42, %44 : vector<2x32xf32>
    %c0_24 = arith.constant 0 : index
    %c0_25 = arith.constant 0 : index
    %46 = vector.load %arg11[%c0_24, %c0_25] : memref<16x32xf32, #tpu.memory_space<vmem>>, vector<2x32xf32>
    tpu.vector_store %arg11[%c0_24, %c0_25], %45 {strides = array<i32>} : memref<16x32xf32, #tpu.memory_space<vmem>>, vector<2x32xf32>,
    %47 = vector.extract_strided_slice %29 {offsets = [2, 0], sizes = [2, 128], strides = [1, 1]} : vector<16x128xf32> to vector<2x128xf32>
    %c0_26 = arith.constant 0 : index
    %c0_27 = arith.constant 0 : index
    %48 = vector.load %arg7[%c0_26, %c0_27] : memref<32x128xf32, #tpu.memory_space<vmem>>, vector<32x128xf32>
    %cst_28 = arith.constant dense<0.000000e+00> : vector<2x128xf32>
    %49 = tpu.matmul %45, %48, %cst_28 {dimension_numbers = #tpu.dot_dimension_numbers<[1], [0], [0], [1], [0, 0, 1, 1], [], []>} : vector<2x32xf32>, vector<32x128xf32>, vector<2x128xf32> -> vector<2x128xf32>
    %50 = arith.addf %47, %49 : vector<2x128xf32>
    %51 = math.tanh %50 : vector<2x128xf32>
    %52 = vector.extract_strided_slice %51 {offsets = [0, 0], sizes = [2, 32], strides = [1, 1]} : vector<2x128xf32> to vector<2x32xf32>
    %cst_29 = arith.constant 1.000000e+00 : f32
    %53 = vector.broadcast %cst_29 : f32 to vector<2x32xf32>
    %54 = arith.addf %53, %52 : vector<2x32xf32>
    %cst_30 = arith.constant 5.000000e-01 : f32
    %55 = vector.broadcast %cst_30 : f32 to vector<2x32xf32>
    %56 = arith.mulf %55, %54 : vector<2x32xf32>
    %57 = vector.extract_strided_slice %51 {offsets = [0, 32], sizes = [2, 32], strides = [1, 1]} : vector<2x128xf32> to vector<2x32xf32>
    %cst_31 = arith.constant 1.000000e+00 : f32
    %58 = vector.broadcast %cst_31 : f32 to vector<2x32xf32>
    %59 = arith.addf %58, %57 : vector<2x32xf32>
    %cst_32 = arith.constant 5.000000e-01 : f32
    %60 = vector.broadcast %cst_32 : f32 to vector<2x32xf32>
    %61 = arith.mulf %60, %59 : vector<2x32xf32>
    %62 = vector.extract_strided_slice %51 {offsets = [0, 64], sizes = [2, 32], strides = [1, 1]} : vector<2x128xf32> to vector<2x32xf32>
    %63 = vector.extract_strided_slice %51 {offsets = [0, 96], sizes = [2, 32], strides = [1, 1]} : vector<2x128xf32> to vector<2x32xf32>
    %cst_33 = arith.constant 1.000000e+00 : f32
    %64 = vector.broadcast %cst_33 : f32 to vector<2x32xf32>
    %65 = arith.addf %64, %63 : vector<2x32xf32>
    %cst_34 = arith.constant 5.000000e-01 : f32
    %66 = vector.broadcast %cst_34 : f32 to vector<2x32xf32>
    %67 = arith.mulf %66, %65 : vector<2x32xf32>
    %68 = arith.mulf %61, %43 : vector<2x32xf32>
    %69 = arith.mulf %56, %62 : vector<2x32xf32>
    %70 = arith.addf %68, %69 : vector<2x32xf32>
    %71 = math.tanh %70 : vector<2x32xf32>
    %72 = arith.mulf %67, %71 : vector<2x32xf32>
    %c2 = arith.constant 2 : index
    %c0_35 = arith.constant 0 : index
    %73 = vector.load %arg11[%c2, %c0_35] : memref<16x32xf32, #tpu.memory_space<vmem>>, vector<2x32xf32>
    tpu.vector_store %arg11[%c2, %c0_35], %72 {strides = array<i32>} : memref<16x32xf32, #tpu.memory_space<vmem>>, vector<2x32xf32>,
    %74 = vector.extract_strided_slice %29 {offsets = [4, 0], sizes = [2, 128], strides = [1, 1]} : vector<16x128xf32> to vector<2x128xf32>
    %c0_36 = arith.constant 0 : index
    %c0_37 = arith.constant 0 : index
    %75 = vector.load %arg7[%c0_36, %c0_37] : memref<32x128xf32, #tpu.memory_space<vmem>>, vector<32x128xf32>
    %cst_38 = arith.constant dense<0.000000e+00> : vector<2x128xf32>
    %76 = tpu.matmul %72, %75, %cst_38 {dimension_numbers = #tpu.dot_dimension_numbers<[1], [0], [0], [1], [0, 0, 1, 1], [], []>} : vector<2x32xf32>, vector<32x128xf32>, vector<2x128xf32> -> vector<2x128xf32>
    %77 = arith.addf %74, %76 : vector<2x128xf32>
    %78 = math.tanh %77 : vector<2x128xf32>
    %79 = vector.extract_strided_slice %78 {offsets = [0, 0], sizes = [2, 32], strides = [1, 1]} : vector<2x128xf32> to vector<2x32xf32>
    %cst_39 = arith.constant 1.000000e+00 : f32
    %80 = vector.broadcast %cst_39 : f32 to vector<2x32xf32>
    %81 = arith.addf %80, %79 : vector<2x32xf32>
    %cst_40 = arith.constant 5.000000e-01 : f32
    %82 = vector.broadcast %cst_40 : f32 to vector<2x32xf32>
    %83 = arith.mulf %82, %81 : vector<2x32xf32>
    %84 = vector.extract_strided_slice %78 {offsets = [0, 32], sizes = [2, 32], strides = [1, 1]} : vector<2x128xf32> to vector<2x32xf32>
    %cst_41 = arith.constant 1.000000e+00 : f32
    %85 = vector.broadcast %cst_41 : f32 to vector<2x32xf32>
    %86 = arith.addf %85, %84 : vector<2x32xf32>
    %cst_42 = arith.constant 5.000000e-01 : f32
    %87 = vector.broadcast %cst_42 : f32 to vector<2x32xf32>
    %88 = arith.mulf %87, %86 : vector<2x32xf32>
    %89 = vector.extract_strided_slice %78 {offsets = [0, 64], sizes = [2, 32], strides = [1, 1]} : vector<2x128xf32> to vector<2x32xf32>
    %90 = vector.extract_strided_slice %78 {offsets = [0, 96], sizes = [2, 32], strides = [1, 1]} : vector<2x128xf32> to vector<2x32xf32>
    %cst_43 = arith.constant 1.000000e+00 : f32
    %91 = vector.broadcast %cst_43 : f32 to vector<2x32xf32>
    %92 = arith.addf %91, %90 : vector<2x32xf32>
    %cst_44 = arith.constant 5.000000e-01 : f32
    %93 = vector.broadcast %cst_44 : f32 to vector<2x32xf32>
    %94 = arith.mulf %93, %92 : vector<2x32xf32>
    %95 = arith.mulf %88, %70 : vector<2x32xf32>
    %96 = arith.mulf %83, %89 : vector<2x32xf32>
    %97 = arith.addf %95, %96 : vector<2x32xf32>
    %98 = math.tanh %97 : vector<2x32xf32>
    %99 = arith.mulf %94, %98 : vector<2x32xf32>
    %c4 = arith.constant 4 : index
    %c0_45 = arith.constant 0 : index
    %100 = vector.load %arg11[%c4, %c0_45] : memref<16x32xf32, #tpu.memory_space<vmem>>, vector<2x32xf32>
    tpu.vector_store %arg11[%c4, %c0_45], %99 {strides = array<i32>} : memref<16x32xf32, #tpu.memory_space<vmem>>, vector<2x32xf32>,
    %101 = vector.extract_strided_slice %29 {offsets = [6, 0], sizes = [2, 128], strides = [1, 1]} : vector<16x128xf32> to vector<2x128xf32>
    %c0_46 = arith.constant 0 : index
    %c0_47 = arith.constant 0 : index
    %102 = vector.load %arg7[%c0_46, %c0_47] : memref<32x128xf32, #tpu.memory_space<vmem>>, vector<32x128xf32>
    %cst_48 = arith.constant dense<0.000000e+00> : vector<2x128xf32>
    %103 = tpu.matmul %99, %102, %cst_48 {dimension_numbers = #tpu.dot_dimension_numbers<[1], [0], [0], [1], [0, 0, 1, 1], [], []>} : vector<2x32xf32>, vector<32x128xf32>, vector<2x128xf32> -> vector<2x128xf32>
    %104 = arith.addf %101, %103 : vector<2x128xf32>
    %105 = math.tanh %104 : vector<2x128xf32>
    %106 = vector.extract_strided_slice %105 {offsets = [0, 0], sizes = [2, 32], strides = [1, 1]} : vector<2x128xf32> to vector<2x32xf32>
    %cst_49 = arith.constant 1.000000e+00 : f32
    %107 = vector.broadcast %cst_49 : f32 to vector<2x32xf32>
    %108 = arith.addf %107, %106 : vector<2x32xf32>
    %cst_50 = arith.constant 5.000000e-01 : f32
    %109 = vector.broadcast %cst_50 : f32 to vector<2x32xf32>
    %110 = arith.mulf %109, %108 : vector<2x32xf32>
    %111 = vector.extract_strided_slice %105 {offsets = [0, 32], sizes = [2, 32], strides = [1, 1]} : vector<2x128xf32> to vector<2x32xf32>
    %cst_51 = arith.constant 1.000000e+00 : f32
    %112 = vector.broadcast %cst_51 : f32 to vector<2x32xf32>
    %113 = arith.addf %112, %111 : vector<2x32xf32>
    %cst_52 = arith.constant 5.000000e-01 : f32
    %114 = vector.broadcast %cst_52 : f32 to vector<2x32xf32>
    %115 = arith.mulf %114, %113 : vector<2x32xf32>
    %116 = vector.extract_strided_slice %105 {offsets = [0, 64], sizes = [2, 32], strides = [1, 1]} : vector<2x128xf32> to vector<2x32xf32>
    %117 = vector.extract_strided_slice %105 {offsets = [0, 96], sizes = [2, 32], strides = [1, 1]} : vector<2x128xf32> to vector<2x32xf32>
    %cst_53 = arith.constant 1.000000e+00 : f32
    %118 = vector.broadcast %cst_53 : f32 to vector<2x32xf32>
    %119 = arith.addf %118, %117 : vector<2x32xf32>
    %cst_54 = arith.constant 5.000000e-01 : f32
    %120 = vector.broadcast %cst_54 : f32 to vector<2x32xf32>
    %121 = arith.mulf %120, %119 : vector<2x32xf32>
    %122 = arith.mulf %115, %97 : vector<2x32xf32>
    %123 = arith.mulf %110, %116 : vector<2x32xf32>
    %124 = arith.addf %122, %123 : vector<2x32xf32>
    %125 = math.tanh %124 : vector<2x32xf32>
    %126 = arith.mulf %121, %125 : vector<2x32xf32>
    %c6 = arith.constant 6 : index
    %c0_55 = arith.constant 0 : index
    %127 = vector.load %arg11[%c6, %c0_55] : memref<16x32xf32, #tpu.memory_space<vmem>>, vector<2x32xf32>
    tpu.vector_store %arg11[%c6, %c0_55], %126 {strides = array<i32>} : memref<16x32xf32, #tpu.memory_space<vmem>>, vector<2x32xf32>,
    %128 = vector.extract_strided_slice %29 {offsets = [8, 0], sizes = [2, 128], strides = [1, 1]} : vector<16x128xf32> to vector<2x128xf32>
    %c0_56 = arith.constant 0 : index
    %c0_57 = arith.constant 0 : index
    %129 = vector.load %arg7[%c0_56, %c0_57] : memref<32x128xf32, #tpu.memory_space<vmem>>, vector<32x128xf32>
    %cst_58 = arith.constant dense<0.000000e+00> : vector<2x128xf32>
    %130 = tpu.matmul %126, %129, %cst_58 {dimension_numbers = #tpu.dot_dimension_numbers<[1], [0], [0], [1], [0, 0, 1, 1], [], []>} : vector<2x32xf32>, vector<32x128xf32>, vector<2x128xf32> -> vector<2x128xf32>
    %131 = arith.addf %128, %130 : vector<2x128xf32>
    %132 = math.tanh %131 : vector<2x128xf32>
    %133 = vector.extract_strided_slice %132 {offsets = [0, 0], sizes = [2, 32], strides = [1, 1]} : vector<2x128xf32> to vector<2x32xf32>
    %cst_59 = arith.constant 1.000000e+00 : f32
    %134 = vector.broadcast %cst_59 : f32 to vector<2x32xf32>
    %135 = arith.addf %134, %133 : vector<2x32xf32>
    %cst_60 = arith.constant 5.000000e-01 : f32
    %136 = vector.broadcast %cst_60 : f32 to vector<2x32xf32>
    %137 = arith.mulf %136, %135 : vector<2x32xf32>
    %138 = vector.extract_strided_slice %132 {offsets = [0, 32], sizes = [2, 32], strides = [1, 1]} : vector<2x128xf32> to vector<2x32xf32>
    %cst_61 = arith.constant 1.000000e+00 : f32
    %139 = vector.broadcast %cst_61 : f32 to vector<2x32xf32>
    %140 = arith.addf %139, %138 : vector<2x32xf32>
    %cst_62 = arith.constant 5.000000e-01 : f32
    %141 = vector.broadcast %cst_62 : f32 to vector<2x32xf32>
    %142 = arith.mulf %141, %140 : vector<2x32xf32>
    %143 = vector.extract_strided_slice %132 {offsets = [0, 64], sizes = [2, 32], strides = [1, 1]} : vector<2x128xf32> to vector<2x32xf32>
    %144 = vector.extract_strided_slice %132 {offsets = [0, 96], sizes = [2, 32], strides = [1, 1]} : vector<2x128xf32> to vector<2x32xf32>
    %cst_63 = arith.constant 1.000000e+00 : f32
    %145 = vector.broadcast %cst_63 : f32 to vector<2x32xf32>
    %146 = arith.addf %145, %144 : vector<2x32xf32>
    %cst_64 = arith.constant 5.000000e-01 : f32
    %147 = vector.broadcast %cst_64 : f32 to vector<2x32xf32>
    %148 = arith.mulf %147, %146 : vector<2x32xf32>
    %149 = arith.mulf %142, %124 : vector<2x32xf32>
    %150 = arith.mulf %137, %143 : vector<2x32xf32>
    %151 = arith.addf %149, %150 : vector<2x32xf32>
    %152 = math.tanh %151 : vector<2x32xf32>
    %153 = arith.mulf %148, %152 : vector<2x32xf32>
    %c8 = arith.constant 8 : index
    %c0_65 = arith.constant 0 : index
    %154 = vector.load %arg11[%c8, %c0_65] : memref<16x32xf32, #tpu.memory_space<vmem>>, vector<2x32xf32>
    tpu.vector_store %arg11[%c8, %c0_65], %153 {strides = array<i32>} : memref<16x32xf32, #tpu.memory_space<vmem>>, vector<2x32xf32>,
    %155 = vector.extract_strided_slice %29 {offsets = [10, 0], sizes = [2, 128], strides = [1, 1]} : vector<16x128xf32> to vector<2x128xf32>
    %c0_66 = arith.constant 0 : index
    %c0_67 = arith.constant 0 : index
    %156 = vector.load %arg7[%c0_66, %c0_67] : memref<32x128xf32, #tpu.memory_space<vmem>>, vector<32x128xf32>
    %cst_68 = arith.constant dense<0.000000e+00> : vector<2x128xf32>
    %157 = tpu.matmul %153, %156, %cst_68 {dimension_numbers = #tpu.dot_dimension_numbers<[1], [0], [0], [1], [0, 0, 1, 1], [], []>} : vector<2x32xf32>, vector<32x128xf32>, vector<2x128xf32> -> vector<2x128xf32>
    %158 = arith.addf %155, %157 : vector<2x128xf32>
    %159 = math.tanh %158 : vector<2x128xf32>
    %160 = vector.extract_strided_slice %159 {offsets = [0, 0], sizes = [2, 32], strides = [1, 1]} : vector<2x128xf32> to vector<2x32xf32>
    %cst_69 = arith.constant 1.000000e+00 : f32
    %161 = vector.broadcast %cst_69 : f32 to vector<2x32xf32>
    %162 = arith.addf %161, %160 : vector<2x32xf32>
    %cst_70 = arith.constant 5.000000e-01 : f32
    %163 = vector.broadcast %cst_70 : f32 to vector<2x32xf32>
    %164 = arith.mulf %163, %162 : vector<2x32xf32>
    %165 = vector.extract_strided_slice %159 {offsets = [0, 32], sizes = [2, 32], strides = [1, 1]} : vector<2x128xf32> to vector<2x32xf32>
    %cst_71 = arith.constant 1.000000e+00 : f32
    %166 = vector.broadcast %cst_71 : f32 to vector<2x32xf32>
    %167 = arith.addf %166, %165 : vector<2x32xf32>
    %cst_72 = arith.constant 5.000000e-01 : f32
    %168 = vector.broadcast %cst_72 : f32 to vector<2x32xf32>
    %169 = arith.mulf %168, %167 : vector<2x32xf32>
    %170 = vector.extract_strided_slice %159 {offsets = [0, 64], sizes = [2, 32], strides = [1, 1]} : vector<2x128xf32> to vector<2x32xf32>
    %171 = vector.extract_strided_slice %159 {offsets = [0, 96], sizes = [2, 32], strides = [1, 1]} : vector<2x128xf32> to vector<2x32xf32>
    %cst_73 = arith.constant 1.000000e+00 : f32
    %172 = vector.broadcast %cst_73 : f32 to vector<2x32xf32>
    %173 = arith.addf %172, %171 : vector<2x32xf32>
    %cst_74 = arith.constant 5.000000e-01 : f32
    %174 = vector.broadcast %cst_74 : f32 to vector<2x32xf32>
    %175 = arith.mulf %174, %173 : vector<2x32xf32>
    %176 = arith.mulf %169, %151 : vector<2x32xf32>
    %177 = arith.mulf %164, %170 : vector<2x32xf32>
    %178 = arith.addf %176, %177 : vector<2x32xf32>
    %179 = math.tanh %178 : vector<2x32xf32>
    %180 = arith.mulf %175, %179 : vector<2x32xf32>
    %c10 = arith.constant 10 : index
    %c0_75 = arith.constant 0 : index
    %181 = vector.load %arg11[%c10, %c0_75] : memref<16x32xf32, #tpu.memory_space<vmem>>, vector<2x32xf32>
    tpu.vector_store %arg11[%c10, %c0_75], %180 {strides = array<i32>} : memref<16x32xf32, #tpu.memory_space<vmem>>, vector<2x32xf32>,
    %182 = vector.extract_strided_slice %29 {offsets = [12, 0], sizes = [2, 128], strides = [1, 1]} : vector<16x128xf32> to vector<2x128xf32>
    %c0_76 = arith.constant 0 : index
    %c0_77 = arith.constant 0 : index
    %183 = vector.load %arg7[%c0_76, %c0_77] : memref<32x128xf32, #tpu.memory_space<vmem>>, vector<32x128xf32>
    %cst_78 = arith.constant dense<0.000000e+00> : vector<2x128xf32>
    %184 = tpu.matmul %180, %183, %cst_78 {dimension_numbers = #tpu.dot_dimension_numbers<[1], [0], [0], [1], [0, 0, 1, 1], [], []>} : vector<2x32xf32>, vector<32x128xf32>, vector<2x128xf32> -> vector<2x128xf32>
    %185 = arith.addf %182, %184 : vector<2x128xf32>
    %186 = math.tanh %185 : vector<2x128xf32>
    %187 = vector.extract_strided_slice %186 {offsets = [0, 0], sizes = [2, 32], strides = [1, 1]} : vector<2x128xf32> to vector<2x32xf32>
    %cst_79 = arith.constant 1.000000e+00 : f32
    %188 = vector.broadcast %cst_79 : f32 to vector<2x32xf32>
    %189 = arith.addf %188, %187 : vector<2x32xf32>
    %cst_80 = arith.constant 5.000000e-01 : f32
    %190 = vector.broadcast %cst_80 : f32 to vector<2x32xf32>
    %191 = arith.mulf %190, %189 : vector<2x32xf32>
    %192 = vector.extract_strided_slice %186 {offsets = [0, 32], sizes = [2, 32], strides = [1, 1]} : vector<2x128xf32> to vector<2x32xf32>
    %cst_81 = arith.constant 1.000000e+00 : f32
    %193 = vector.broadcast %cst_81 : f32 to vector<2x32xf32>
    %194 = arith.addf %193, %192 : vector<2x32xf32>
    %cst_82 = arith.constant 5.000000e-01 : f32
    %195 = vector.broadcast %cst_82 : f32 to vector<2x32xf32>
    %196 = arith.mulf %195, %194 : vector<2x32xf32>
    %197 = vector.extract_strided_slice %186 {offsets = [0, 64], sizes = [2, 32], strides = [1, 1]} : vector<2x128xf32> to vector<2x32xf32>
    %198 = vector.extract_strided_slice %186 {offsets = [0, 96], sizes = [2, 32], strides = [1, 1]} : vector<2x128xf32> to vector<2x32xf32>
    %cst_83 = arith.constant 1.000000e+00 : f32
    %199 = vector.broadcast %cst_83 : f32 to vector<2x32xf32>
    %200 = arith.addf %199, %198 : vector<2x32xf32>
    %cst_84 = arith.constant 5.000000e-01 : f32
    %201 = vector.broadcast %cst_84 : f32 to vector<2x32xf32>
    %202 = arith.mulf %201, %200 : vector<2x32xf32>
    %203 = arith.mulf %196, %178 : vector<2x32xf32>
    %204 = arith.mulf %191, %197 : vector<2x32xf32>
    %205 = arith.addf %203, %204 : vector<2x32xf32>
    %206 = math.tanh %205 : vector<2x32xf32>
    %207 = arith.mulf %202, %206 : vector<2x32xf32>
    %c12 = arith.constant 12 : index
    %c0_85 = arith.constant 0 : index
    %208 = vector.load %arg11[%c12, %c0_85] : memref<16x32xf32, #tpu.memory_space<vmem>>, vector<2x32xf32>
    tpu.vector_store %arg11[%c12, %c0_85], %207 {strides = array<i32>} : memref<16x32xf32, #tpu.memory_space<vmem>>, vector<2x32xf32>,
    %209 = vector.extract_strided_slice %29 {offsets = [14, 0], sizes = [2, 128], strides = [1, 1]} : vector<16x128xf32> to vector<2x128xf32>
    %c0_86 = arith.constant 0 : index
    %c0_87 = arith.constant 0 : index
    %210 = vector.load %arg7[%c0_86, %c0_87] : memref<32x128xf32, #tpu.memory_space<vmem>>, vector<32x128xf32>
    %cst_88 = arith.constant dense<0.000000e+00> : vector<2x128xf32>
    %211 = tpu.matmul %207, %210, %cst_88 {dimension_numbers = #tpu.dot_dimension_numbers<[1], [0], [0], [1], [0, 0, 1, 1], [], []>} : vector<2x32xf32>, vector<32x128xf32>, vector<2x128xf32> -> vector<2x128xf32>
    %212 = arith.addf %209, %211 : vector<2x128xf32>
    %213 = math.tanh %212 : vector<2x128xf32>
    %214 = vector.extract_strided_slice %213 {offsets = [0, 0], sizes = [2, 32], strides = [1, 1]} : vector<2x128xf32> to vector<2x32xf32>
    %cst_89 = arith.constant 1.000000e+00 : f32
    %215 = vector.broadcast %cst_89 : f32 to vector<2x32xf32>
    %216 = arith.addf %215, %214 : vector<2x32xf32>
    %cst_90 = arith.constant 5.000000e-01 : f32
    %217 = vector.broadcast %cst_90 : f32 to vector<2x32xf32>
    %218 = arith.mulf %217, %216 : vector<2x32xf32>
    %219 = vector.extract_strided_slice %213 {offsets = [0, 32], sizes = [2, 32], strides = [1, 1]} : vector<2x128xf32> to vector<2x32xf32>
    %cst_91 = arith.constant 1.000000e+00 : f32
    %220 = vector.broadcast %cst_91 : f32 to vector<2x32xf32>
    %221 = arith.addf %220, %219 : vector<2x32xf32>
    %cst_92 = arith.constant 5.000000e-01 : f32
    %222 = vector.broadcast %cst_92 : f32 to vector<2x32xf32>
    %223 = arith.mulf %222, %221 : vector<2x32xf32>
    %224 = vector.extract_strided_slice %213 {offsets = [0, 64], sizes = [2, 32], strides = [1, 1]} : vector<2x128xf32> to vector<2x32xf32>
    %225 = vector.extract_strided_slice %213 {offsets = [0, 96], sizes = [2, 32], strides = [1, 1]} : vector<2x128xf32> to vector<2x32xf32>
    %cst_93 = arith.constant 1.000000e+00 : f32
    %226 = vector.broadcast %cst_93 : f32 to vector<2x32xf32>
    %227 = arith.addf %226, %225 : vector<2x32xf32>
    %cst_94 = arith.constant 5.000000e-01 : f32
    %228 = vector.broadcast %cst_94 : f32 to vector<2x32xf32>
    %229 = arith.mulf %228, %227 : vector<2x32xf32>
    %230 = arith.mulf %223, %205 : vector<2x32xf32>
    %231 = arith.mulf %218, %224 : vector<2x32xf32>
    %232 = arith.addf %230, %231 : vector<2x32xf32>
    %233 = math.tanh %232 : vector<2x32xf32>
    %234 = arith.mulf %229, %233 : vector<2x32xf32>
    %c14 = arith.constant 14 : index
    %c0_95 = arith.constant 0 : index
    %235 = vector.load %arg11[%c14, %c0_95] : memref<16x32xf32, #tpu.memory_space<vmem>>, vector<2x32xf32>
    tpu.vector_store %arg11[%c14, %c0_95], %234 {strides = array<i32>} : memref<16x32xf32, #tpu.memory_space<vmem>>, vector<2x32xf32>,
    %c0_96 = arith.constant 0 : index
    %c0_97 = arith.constant 0 : index
    %236 = vector.load %arg13[%c0_96, %c0_97] : memref<4x32xf32, #tpu.memory_space<vmem>>, vector<2x32xf32>
    tpu.vector_store %arg13[%c0_96, %c0_97], %234 {strides = array<i32>} : memref<4x32xf32, #tpu.memory_space<vmem>>, vector<2x32xf32>,
    %c2_98 = arith.constant 2 : index
    %c0_99 = arith.constant 0 : index
    %237 = vector.load %arg13[%c2_98, %c0_99] : memref<4x32xf32, #tpu.memory_space<vmem>>, vector<2x32xf32>
    tpu.vector_store %arg13[%c2_98, %c0_99], %232 {strides = array<i32>} : memref<4x32xf32, #tpu.memory_space<vmem>>, vector<2x32xf32>,
    %c0_100 = arith.constant 0 : index
    %c0_101 = arith.constant 0 : index
    %238 = vector.load %arg13[%c0_100, %c0_101] : memref<4x32xf32, #tpu.memory_space<vmem>>, vector<4x32xf32>
    %c0_102 = arith.constant 0 : index
    %c0_103 = arith.constant 0 : index
    %239 = vector.load %arg9[%c0_102, %c0_103] : memref<32x8xf32, #tpu.memory_space<vmem>>, vector<32x8xf32>
    %cst_104 = arith.constant dense<0.000000e+00> : vector<4x8xf32>
    %240 = tpu.matmul %238, %239, %cst_104 {dimension_numbers = #tpu.dot_dimension_numbers<[1], [0], [0], [1], [0, 0, 1, 1], [], []>} : vector<4x32xf32>, vector<32x8xf32>, vector<4x8xf32> -> vector<4x8xf32>
    %c0_105 = arith.constant 0 : index
    %c0_106 = arith.constant 0 : index
    %241 = vector.load %arg10[%c0_105, %c0_106] : memref<1x8xf32, #tpu.memory_space<vmem>>, vector<1x8xf32>
    %242 = vector.broadcast %241 : vector<1x8xf32> to vector<4x8xf32>
    %243 = arith.addf %240, %242 : vector<4x8xf32>
    %c0_107 = arith.constant 0 : index
    %c0_108 = arith.constant 0 : index
    %244 = vector.load %arg12[%c0_107, %c0_108] : memref<4x8xf32, #tpu.memory_space<vmem>>, vector<4x8xf32>
    tpu.vector_store %arg12[%c0_107, %c0_108], %243 {strides = array<i32>} : memref<4x8xf32, #tpu.memory_space<vmem>>, vector<4x8xf32>,
    return
  }
}

</mosaic_0001>

<bundles_post_ra>
// kernel: tile.13
= control target key start
LH: loop header
LB: loop body
LE: loop exit
PB: predicated region body
PF: predicated region fallthrough
CT: control target
= control target key end

     0   :  { %s22_s0 = inlined_call_operand.vmem [shape: f32[8], index: 0, kind: input, shape index: {}]   ;;  %s23_s1 = inlined_call_operand.vmem [shape: f32[8,8], index: 1, kind: output, shape index: {}]  }
   0x1   :  { %v4_v0 = vld [vmem:[%s22_s0] ss:$0 sm:$0xff] }
   0x2   :  { %5 = vst [vmem:[%s23_s1] sm:$0xff] %v4_v0 }

// kernel: tile.14
= control target key start
LH: loop header
LB: loop body
LE: loop exit
PB: predicated region body
PF: predicated region fallthrough
CT: control target
= control target key end

     0   :  { %s67_s10 = smov 56   ;;  %s68_s11 = smov 40   ;;  %vm3_vm0 = vcmask 64512   ;;  %vm9_vm1 = vcmask 523712   ;;  %vm15_vm2 = vcmask 458112   ;;  %vm21_vm3 = vcmask 392512   ;;  %s111_s0 = inlined_call_operand.vmem [shape: f32[8,8], index: 0, kind: input, shape index: {}]   ;;  %s112_s1 = inlined_call_operand.vmem [shape: f32[1,64], index: 1, kind: output, shape index: {}]  }
   0x1   :  { %v53_v0 = vld [vmem:[%s111_s0 + $0x7] sm:$0x1]   ;;  %v55_v1 = vld [vmem:[%s111_s0 + $0x5] sm:$0x1]   ;;  %v57_v2 = vld [vmem:[%s111_s0 + $0x3] sm:$0x1]  }
   0x2   :  { %7 = vrot.lane.b32.xlu0 %v53_v0, %s67_s10  ;;  %19 = vrot.lane.b32.xlu1 %v55_v1, %s68_s11  ;;  %s69_s14 = smov 24   ;;  %v54_v3 = vld [vmem:[%s111_s0 + $0x6] sm:$0x1]   ;;  %v56_v4 = vld [vmem:[%s111_s0 + $0x4] sm:$0x1]   ;;  %s70_s21 = smov 48  }
   0x3   :  { %31 = vrot.lane.b32.xlu2 %v57_v2, %s69_s14  ;;  %v58_v5 = vld [vmem:[%s111_s0 + $0x2] sm:$0x1]   ;;  %s71_s22 = smov 32   ;;  %s72_s23 = smov 16   ;;  %v59_v6 = vld [vmem:[%s111_s0 + $0x1] sm:$0x1]  }
   0x4   :  { %s73_s26 = smov 8   ;;  %v2_v7 = vld [vmem:[%s111_s0] sm:$0x1]   ;;  %vm27_vm4 = vcmask 326912   ;;  %vm33_vm5 = vcmask 261312   ;;  %vm39_vm6 = vcmask 195712  }
   0x5   :  { %4 = vst.msk [vmem:[#allocation0] sm:$0x1] %vm3_vm0, %v2_v7   ;;  %vm45_vm7 = vcmask 130112  }
   0xa   :  { %13 = vrot.lane.b32.xlu0 %v54_v3, %s70_s21  ;;  %25 = vrot.lane.b32.xlu1 %v56_v4, %s71_s22 }
   0xb   :  { %37 = vrot.lane.b32.xlu2 %v58_v5, %s72_s23 }
  0x12   :  { %43 = vrot.lane.b32.xlu0 %v59_v6, %s73_s26 }
  0x5d   :  { %v32_v8 = vpop.permute.xlu2 %31  }
  0x65   :  { %v38_v9 = vpop.permute.xlu2 %37  }
  0x74   :  { %v8_v10 = vpop.permute.xlu0 %7   ;;  %v20_v11 = vpop.permute.xlu1 %19  }
  0x75   :  { %10 = vst.msk [vmem:[#allocation0] sm:$0x1] %vm9_vm1, %v8_v10  }
  0x7c   :  { %v14_v12 = vpop.permute.xlu0 %13   ;;  %v26_v13 = vpop.permute.xlu1 %25  }
  0x7d   :  { %16 = vst.msk [vmem:[#allocation0] sm:$0x1] %vm15_vm2, %v14_v12  }
  0x7e   :  { %22 = vst.msk [vmem:[#allocation0] sm:$0x1] %vm21_vm3, %v20_v11  }
  0x7f   :  { %28 = vst.msk [vmem:[#allocation0] sm:$0x1] %vm27_vm4, %v26_v13  }
  0x80   :  { %34 = vst.msk [vmem:[#allocation0] sm:$0x1] %vm33_vm5, %v32_v8  }
  0x81   :  { %40 = vst.msk [vmem:[#allocation0] sm:$0x1] %vm39_vm6, %v38_v9  }
  0x84   :  { %v44_v14 = vpop.permute.xlu0 %43  }
  0x85   :  { %46 = vst.msk [vmem:[#allocation0] sm:$0x1] %vm45_vm7, %v44_v14  }
  0x8c   :  { %v49_v15 = vld [vmem:[#allocation0] sm:$0x1] }
  0x8d   :  { %52 = vst [vmem:[%s112_s1] sm:$0x1] %v49_v15 }

// kernel: mul.31
= control target key start
LH: loop header
LB: loop body
LE: loop exit
PB: predicated region body
PF: predicated region fallthrough
CT: control target
= control target key end

     0   :  { %s34_s0 = inlined_call_operand.vmem [shape: f32[1,128], index: 0, kind: input, shape index: {}]   ;;  %s35_s1 = inlined_call_operand.vmem [shape: f32[1,128], index: 1, kind: input, shape index: {}]   ;;  %s36_s2 = inlined_call_operand.vmem [shape: f32[1,128], index: 2, kind: output, shape index: {}]  }
   0x1   :  { %v3_v0 = vld [vmem:[%s34_s0] sm:$0x1] }
   0x2   :  { %v4_v1 = vld [vmem:[%s35_s1] sm:$0x1] }
   0x3   :  { %v7_v2 = vmul.f32 %v4_v1, %v3_v0 }
   0x5   :  { %9 = vst [vmem:[%s36_s2] sm:$0x1] %v7_v2 }

// kernel: encoder_forward.1
= control target key start
LH: loop header
LB: loop body
LE: loop exit
PB: predicated region body
PF: predicated region fallthrough
CT: control target
= control target key end

     0   :  { %vm54_vm0 = vcmask 523264   ;;  %vm129_vm1 = vcmask 64512   ;;  %s786_s20 = smov 32   ;;  %vm243_vm2 = vcmask 254976   ;;  %vm249_vm3 = vcmask 261120   ;;  %s1100_s1 = inlined_call_operand.vmem [shape: f32[64,64], index: 1, kind: input, shape index: {}]   ;;  %s1101_s4 = inlined_call_operand.vmem [shape: f32[64,8], index: 4, kind: input, shape index: {}]   ;;  %s1102_s2 = inlined_call_operand.vmem [shape: f32[1,64], index: 2, kind: input, shape index: {}]   ;;  %s1103_s0 = inlined_call_operand.vmem [shape: f32[16,64], index: 0, kind: input, shape index: {}]   ;;  %s1104_s3 = inlined_call_operand.vmem [shape: f32[1,64], index: 3, kind: input, shape index: {}]   ;;  %s1105_s5 = inlined_call_operand.vmem [shape: f32[8,64], index: 5, kind: input, shape index: {}]   ;;  %s1106_s6 = inlined_call_operand.vmem [shape: f32[64,128], index: 6, kind: input, shape index: {}]   ;;  %s1107_s8 = inlined_call_operand.vmem [shape: f32[1,128], index: 8, kind: input, shape index: {}]   ;;  %s1108_s7 = inlined_call_operand.vmem [shape: f32[32,128], index: 7, kind: input, shape index: {}]   ;;  %s1109_s11 = inlined_call_operand.vmem [shape: f32[16,32], index: 11, kind: output, shape index: {0}]   ;;  %s1110_s10 = inlined_call_operand.vmem [shape: f32[1,8], index: 10, kind: input, shape index: {}]   ;;  %s1111_s9 = inlined_call_operand.vmem [shape: f32[32,8], index: 9, kind: input, shape index: {}]   ;;  %s1112_s12 = inlined_call_operand.vmem [shape: f32[4,8], index: 12, kind: output, shape index: {1}]  }
   0x1   :  { %v49_v0 = vld [vmem:[%s1100_s1 + $0x38] sm:$0xff]  ;;  %v48_v1 = vld [vmem:[%s1100_s1 + $0x30] sm:$0xff]  ;;  %v47_v2 = vld [vmem:[%s1100_s1 + $0x28] sm:$0xff]  ;;  %vm429_vm4 = vcmask 261126   ;;  %vm305_vm5 = vcmask 257026   ;;  %vm367_vm6 = vcmask 259076  }
   0x2   :  { %69 = vmatpush.msra.mxu0 %v49_v0  ;;  %v99_v3 = vld [vmem:[%s1101_s4 + $0x38] sm:$0xff]  ;;  %v98_v4 = vld [vmem:[%s1101_s4 + $0x30] sm:$0xff]  ;;  %v46_v5 = vld [vmem:[%s1100_s1 + $0x20] sm:$0xff]  ;;  %vm707_vm7 = vcmask 60416  }
   0x3   :  { %114 = vmatpush.msra.mxu1 %v99_v3  ;;  %v45_v6 = vld [vmem:[%s1100_s1 + $0x18] sm:$0xff]  ;;  %v44_v7 = vld [vmem:[%s1100_s1 + $0x10] sm:$0xff]  ;;  %v43_v8 = vld [vmem:[%s1100_s1 + $0x8] sm:$0xff] }
   0x4   :  { %70 = vmatpush.msra.mxu0 %v48_v1  ;;  %v42_v9 = vld [vmem:[%s1100_s1] sm:$0xff]  ;;  %v97_v11 = vld [vmem:[%s1101_s4 + $0x28] sm:$0xff]  ;;  %v95_v13 = vld [vmem:[%s1101_s4 + $0x18] sm:$0xff] }
   0x5   :  { %115 = vmatpush.msra.mxu1 %v98_v4  ;;  %v885_v10 = vld [vmem:[%s1103_s0] sm:$0xff]  ;;  %v94_v14 = vld [vmem:[%s1101_s4 + $0x10] sm:$0xff]  ;;  %v93_v15 = vld [vmem:[%s1101_s4 + $0x8] sm:$0xff] }
   0x6   :  { %71 = vmatpush.msra.mxu0 %v47_v2  ;;  %v96_v12 = vld [vmem:[%s1101_s4 + $0x20] sm:$0xff]  ;;  %v922_v31 = vld [vmem:[%s1103_s0 + $0x8] sm:$0xff]  ;;  %v191_v32 = vld [vmem:[%s1106_s6 + $0x38] sm:$0xff] }
   0x7   :  { %116 = vmatpush.msra.mxu1 %v97_v11  ;;  %v92_v16 = vld [vmem:[%s1101_s4] sm:$0xff]  ;;  %v190_v33 = vld [vmem:[%s1106_s6 + $0x30] sm:$0xff]  ;;  %210 = vmatpush.msra.mxu3 %v191_v32  ;;  %v189_v34 = vld [vmem:[%s1106_s6 + $0x28] sm:$0xff] }
   0x8   :  { %72 = vmatpush.msra.mxu0 %v46_v5  ;;  %v736_v17 = vld [vmem:[%s1102_s2] ss:$0 sm:$0xff]  ;;  %v187_v36 = vld [vmem:[%s1106_s6 + $0x18] sm:$0xff]  ;;  %v186_v37 = vld [vmem:[%s1106_s6 + $0x10] sm:$0xff] }
   0x9   :  { %117 = vmatpush.msra.mxu1 %v96_v12  ;;  %v737_v20 = vld [vmem:[%s1104_s3] ss:$0 sm:$0xff]  ;;  %211 = vmatpush.msra.mxu3 %v190_v33  ;;  %v185_v41 = vld [vmem:[%s1106_s6 + $0x8] sm:$0xff]  ;;  %v248_v3 = vld [vmem:[%s1108_s7 + $0x18] sm:$0xff] }
   0xa   :  { %73 = vmatpush.msra.mxu0 %v45_v6  ;;  %v152_v30 = vld [vmem:[%s1105_s5] sm:$0xff]  ;;  %v247_v4 = vld [vmem:[%s1108_s7 + $0x10] sm:$0xff]  ;;  %v246_v5 = vld [vmem:[%s1108_s7 + $0x8] sm:$0xff] }
   0xb   :  { %118 = vmatpush.msra.mxu1 %v95_v13  ;;  %174 = vmatpush.msra.mxu2 %v152_v30  ;;  %v188_v35 = vld [vmem:[%s1106_s6 + $0x20] sm:$0xff] }
   0xc   :  { %74 = vmatpush.msra.mxu0 %v44_v7  ;;  %212 = vmatpush.msra.mxu3 %v189_v34  ;;  %v184_v42 = vld [vmem:[%s1106_s6] sm:$0xff]  ;;  %s784_s6 = smov 64  }
   0xd   :  { %119 = vmatpush.msra.mxu1 %v94_v14  ;;  %v957_v49 = vld [vmem:[%s1107_s8] ss:$0 sm:$0xff]  ;;  %s785_s8 = smov 96   ;;  %264 = vmatpush.msrb.mxu2 %v248_v3 }
   0xe   :  { %75 = vmatpush.msra.mxu0 %v43_v8  ;;  %213 = vmatpush.msra.mxu3 %v188_v35  ;;  %v245_v6 = vld [vmem:[%s1108_s7] sm:$0xff] }
   0xf   :  { %120 = vmatpush.msra.mxu1 %v93_v15  ;;  %265 = vmatpush.msrb.mxu2 %v247_v4 }
  0x10   :  { %76 = vmatpush.msra.mxu0 %v42_v9  ;;  %214 = vmatpush.msra.mxu3 %v187_v36 }
  0x11   :  { %717 = vmatmul.msk.f32.vlgmr.msra.gmra.mxu0 %vm54_vm0, %v885_v10  ;;  %121 = vmatpush.msra.mxu1 %v92_v16 }
  0x12   :  { %215 = vmatpush.msra.mxu3 %v186_v37  ;;  %390 = vmatpush.msrb.mxu0 %v248_v3 }
  0x13   :  { %452 = vmatpush.msrb.mxu1 %v248_v3  ;;  %266 = vmatpush.msrb.mxu2 %v246_v5 }
  0x14   :  { %216 = vmatpush.msra.mxu3 %v185_v41  ;;  %391 = vmatpush.msrb.mxu0 %v247_v4 }
  0x15   :  { %453 = vmatpush.msrb.mxu1 %v247_v4  ;;  %267 = vmatpush.msrb.mxu2 %v245_v6 }
  0x16   :  { %217 = vmatpush.msra.mxu3 %v184_v42  ;;  %392 = vmatpush.msrb.mxu0 %v246_v5 }
  0x17   :  { %454 = vmatpush.msrb.mxu1 %v246_v5 }
  0x18   :  { %507 = vmatpush.msrb.mxu3 %v248_v3  ;;  %393 = vmatpush.msrb.mxu0 %v245_v6 }
  0x19   :  { %718 = vmatmul.msk.f32.gmra.mxu0 %vm54_vm0, %v922_v31  ;;  %455 = vmatpush.msrb.mxu1 %v245_v6 }
  0x1a   :  { %508 = vmatpush.msrb.mxu3 %v247_v4  ;;  %629 = vmatpush.msra.mxu0 %v248_v3 }
  0x1c   :  { %509 = vmatpush.msrb.mxu3 %v246_v5  ;;  %630 = vmatpush.msra.mxu0 %v247_v4 }
  0x1e   :  { %510 = vmatpush.msrb.mxu3 %v245_v6  ;;  %631 = vmatpush.msra.mxu0 %v246_v5 }
  0x20   :  { %632 = vmatpush.msra.mxu0 %v245_v6 }
  0x8e   :  { %v78_v18 = vpop.f32.mrf.mxu0 }
  0x8f   :  { %v79_v19 = vadd.f32 %v736_v17, %v78_v18 }
  0x91   :  { %740 = vtanh.f32 %v79_v19 }
  0x96   :  { %v81_v43 = vpop.f32.mrf.mxu0 }
  0x97   :  { %v741_v21 = vpop.eup %740  ;;  %v82_v44 = vadd.f32 %v736_v17, %v81_v43 }
  0x98   :  { %v90_v22 = vmul.f32 %v741_v21, %v737_v20 }
  0x9a   :  { %719 = vmatmul.msk.f32.vlgmr.msra.gmra.mxu1 %vm54_vm0, %v90_v22 }
 0x117   :  { %v123_v23 = vpop.f32.mrf.mxu1 }
 0x118   :  { %v130_v24 = vsel %vm129_vm1, %v123_v23, -inf }
 0x119   :  { %131 = vmax.xlane.f32.xlu0 %v130_v24 }
 0x18c   :  { %v132_v25 = vpop.xlane.xlu0 %131 }
 0x18d   :  { %v136_v26 = vsub.f32 %v123_v23, %v132_v25 }
 0x18f   :  { %v138_v27 = vmul.f32 1.442695, %v136_v26 }
 0x191   :  { %742 = vpow2.f32 %v138_v27 }
 0x197   :  { %v743_v28 = vpop.eup %742 }
 0x198   :  { %v142_v29 = vsel %vm129_vm1, %v743_v28, 0.0 }
 0x199   :  { %143 = vadd.xlane.f32.xlu0 %v142_v29 }
 0x20c   :  { %v144_v38 = vpop.xlane.xlu0 %143 }
 0x20d   :  { %744 = vrcp.f32 %v144_v38 }
 0x20e   :  { %746 = vtanh.f32 %v82_v44 }
 0x213   :  { %v745_v39 = vpop.eup %744 }
 0x214   :  { %v150_v40 = vmul.f32 %v745_v39, %v743_v28  ;;  %v747_v45 = vpop.eup %746 }
 0x215   :  { %v91_v46 = vmul.f32 %v747_v45, %v737_v20 }
 0x216   :  { %721 = vmatmul.msk.f32.vlgmr.msra.gmra.mxu2 %vm129_vm1, %v150_v40 }
 0x217   :  { %720 = vmatmul.msk.f32.gmra.mxu1 %vm54_vm0, %v91_v46  ;;  %328 = vmatpush.msra.mxu2 %v248_v3 }
 0x219   :  { %329 = vmatpush.msra.mxu2 %v247_v4 }
 0x21b   :  { %330 = vmatpush.msra.mxu2 %v246_v5 }
 0x21d   :  { %331 = vmatpush.msra.mxu2 %v245_v6 }
 0x294   :  { %v126_v53 = vpop.f32.mrf.mxu1 }
 0x295   :  { %v133_v54 = vsel %vm129_vm1, %v126_v53, -inf }
 0x299   :  { %v176_v47 = vpop.f32.mrf.mxu2 }
 0x29a   :  { %v182_v48 = vmul.f32 %v176_v47, %v885_v10 }
 0x29c   :  { %723 = vmatmul.msk.f32.vlgmr.msra.gmra.mxu3 %vm54_vm0, %v182_v48 }
 0x31f   :  { %v219_v50 = vpop.f32.mrf.mxu3 }
 0x320   :  { %v960_v51 = vadd.f32 %v957_v49, %v219_v50 }
 0x322   :  { %748 = vtanh.f32 %v960_v51 }
 0x328   :  { %v749_v52 = vpop.eup %748 }
 0x329   :  { %229 = vrot.lane.b32.xlu1 %v749_v52, %s784_s6  ;;  %v226_v55 = vadd.f32 1.0, %v749_v52 }
 0x32b   :  { %v227_v56 = vmul.f32 0.5, %v226_v55 }
 0x353   :  { %134 = vmax.xlane.f32.xlu1 %v133_v54 }
 0x39b   :  { %v230_v57 = vpop.permute.xlu1 %229 }
 0x39c   :  { %v965_v58 = vmul.f32 %v230_v57, %v227_v56 }
 0x39e   :  { %750 = vtanh.f32 %v965_v58  ;;  %v280_v17 = vrot.slane %v965_v58, 6 }
 0x3a4   :  { %v751_v59 = vpop.eup %750 }
 0x3a5   :  { %235 = vrot.lane.b32.xlu2 %v751_v59, %s785_s8 }
 0x3c6   :  { %v135_v60 = vpop.xlane.xlu1 %134 }
 0x3c7   :  { %v137_v61 = vsub.f32 %v126_v53, %v135_v60 }
 0x3c9   :  { %v140_v62 = vmul.f32 1.442695, %v137_v61 }
 0x3cb   :  { %752 = vpow2.f32 %v140_v62 }
 0x3d1   :  { %v753_v63 = vpop.eup %752 }
 0x3d2   :  { %v145_v0 = vsel %vm129_vm1, %v753_v63, 0.0 }
 0x3d3   :  { %146 = vadd.xlane.f32.xlu2 %v145_v0 }
 0x3ff   :  { %v236_v1 = vpop.permute.xlu2 %235 }
 0x400   :  { %v238_v2 = vmul.f32 %v236_v1, %v227_v56 }
 0x402   :  { %240 = vrot.lane.b32.xlu0 %v238_v2, %s786_s20 }
 0x446   :  { %v147_v7 = vpop.xlane.xlu2 %146 }
 0x447   :  { %754 = vrcp.f32 %v147_v7 }
 0x44d   :  { %v755_v8 = vpop.eup %754 }
 0x44e   :  { %v151_v9 = vmul.f32 %v755_v8, %v753_v63 }
 0x450   :  { %722 = vmatmul.msk.f32.gmra.mxu2 %vm129_vm1, %v151_v9 }
 0x474   :  { %v241_v10 = vpop.permute.xlu0 %240 }
 0x475   :  { %244 = vst.msk [vmem:[%s1109_s11] sm:$0x3] %vm243_vm2, %v241_v10  ;;  %725 = vmatmul.msk.f32.vlgmr.msrb.gmra.mxu2 %vm249_vm3, %v241_v10 }
 0x476   :  { %568 = vmatpush.msrb.mxu2 %v248_v3 }
 0x478   :  { %569 = vmatpush.msrb.mxu2 %v247_v4 }
 0x47a   :  { %570 = vmatpush.msrb.mxu2 %v246_v5 }
 0x47c   :  { %571 = vmatpush.msrb.mxu2 %v245_v6 }
 0x4d3   :  { %v179_v11 = vpop.f32.mrf.mxu2 }
 0x4d4   :  { %v183_v12 = vmul.f32 %v179_v11, %v922_v31 }
 0x4d6   :  { %724 = vmatmul.msk.f32.gmra.mxu3 %vm54_vm0, %v183_v12 }
 0x4f8   :  { %v269_v13 = vpop.f32.mrf.mxu2 }
 0x4f9   :  { %v273_v14 = vrot.slane %v269_v13, 6 }
 0x4fb   :  { %v275_v15 = vadd.f32 %v273_v14, %v960_v51 }
 0x4fd   :  { %756 = vtanh.f32 %v275_v15 }
 0x503   :  { %v757_v16 = vpop.eup %756 }
 0x504   :  { %286 = vrot.lane.b32.xlu0 %v757_v16, %s784_s6  ;;  %v277_v18 = vadd.f32 1.0, %v757_v16 }
 0x506   :  { %v278_v19 = vmul.f32 0.5, %v277_v18 }
 0x50c   :  { %281 = vrot.lane.b32.xlu0 %v280_v17, %s786_s20 }
 0x559   :  { %v222_v2 = vpop.f32.mrf.mxu3 }
 0x55a   :  { %v1021_v3 = vadd.f32 %v957_v49, %v222_v2 }
 0x576   :  { %v287_v20 = vpop.permute.xlu0 %286 }
 0x577   :  { %v289_v21 = vmul.f32 %v287_v20, %v278_v19 }
 0x579   :  { %291 = vrot.lane.b32.xlu2 %v289_v21, %s786_s20 }
 0x57e   :  { %v282_v22 = vpop.permute.xlu0 %281 }
 0x57f   :  { %v284_v23 = vmul.f32 %v282_v22, %v278_v19 }
 0x5d3   :  { %v292_v24 = vpop.permute.xlu2 %291 }
 0x5d4   :  { %v294_v25 = vadd.f32 %v292_v24, %v284_v23 }
 0x5d6   :  { %758 = vtanh.f32 %v294_v25  ;;  %v344_v39 = vrot.slane %v294_v25, 6 }
 0x5dc   :  { %v759_v26 = vpop.eup %758 }
 0x5dd   :  { %297 = vrot.lane.b32.xlu1 %v759_v26, %s784_s6 }
 0x64f   :  { %v298_v27 = vpop.permute.xlu1 %297 }
 0x650   :  { %v997_v28 = vmul.f32 %v298_v27, %v278_v19 }
 0x652   :  { %v311_v29 = vrot.slane %v997_v28, 2 }
 0x654   :  { %312 = vrot.lane.b32.xlu0 %v311_v29, %s786_s20 }
 0x6c6   :  { %v313_v30 = vpop.permute.xlu0 %312 }
 0x6c7   :  { %726 = vmatmul.msk.f32.vlgmr.msra.gmra.mxu2 %vm249_vm3, %v313_v30 }
 0x74a   :  { %v333_v31 = vpop.f32.mrf.mxu2 }
 0x74b   :  { %v337_v32 = vrot.slane %v333_v31, 4 }
 0x74d   :  { %v339_v33 = vadd.f32 %v337_v32, %v960_v51 }
 0x74f   :  { %760 = vtanh.f32 %v339_v33 }
 0x755   :  { %v761_v34 = vpop.eup %760 }
 0x756   :  { %348 = vrot.lane.b32.xlu0 %v761_v34, %s784_s6  ;;  %v341_v35 = vadd.f32 1.0, %v761_v34 }
 0x758   :  { %v342_v36 = vmul.f32 0.5, %v341_v35 }
 0x75a   :  { %v346_v40 = vmul.f32 %v344_v39, %v342_v36 }
 0x7c8   :  { %v349_v37 = vpop.permute.xlu0 %348 }
 0x7c9   :  { %v351_v38 = vmul.f32 %v349_v37, %v342_v36 }
 0x7cb   :  { %353 = vrot.lane.b32.xlu0 %v351_v38, %s786_s20 }
 0x83d   :  { %v354_v41 = vpop.permute.xlu0 %353 }
 0x83e   :  { %v356_v42 = vadd.f32 %v354_v41, %v346_v40 }
 0x840   :  { %762 = vtanh.f32 %v356_v42  ;;  %v406_v58 = vrot.slane %v356_v42, 6 }
 0x846   :  { %v763_v43 = vpop.eup %762 }
 0x847   :  { %359 = vrot.lane.b32.xlu2 %v763_v43, %s784_s6 }
 0x8a1   :  { %v360_v44 = vpop.permute.xlu2 %359 }
 0x8a2   :  { %v1006_v45 = vmul.f32 %v360_v44, %v342_v36 }
 0x8a4   :  { %v373_v46 = vrot.slane %v1006_v45, 4 }
 0x8a6   :  { %374 = vrot.lane.b32.xlu1 %v373_v46, %s786_s20 }
 0x918   :  { %v375_v47 = vpop.permute.xlu1 %374 }
 0x919   :  { %727 = vmatmul.msk.f32.vlgmr.msrb.gmra.mxu0 %vm249_vm3, %v375_v47 }
 0x996   :  { %v395_v48 = vpop.f32.mrf.mxu0 }
 0x997   :  { %v399_v50 = vrot.slane %v395_v48, 2 }
 0x999   :  { %v401_v52 = vadd.f32 %v399_v50, %v960_v51 }
 0x99b   :  { %764 = vtanh.f32 %v401_v52 }
 0x9a1   :  { %v765_v53 = vpop.eup %764 }
 0x9a2   :  { %410 = vrot.lane.b32.xlu0 %v765_v53, %s784_s6  ;;  %v403_v54 = vadd.f32 1.0, %v765_v53 }
 0x9a4   :  { %v404_v55 = vmul.f32 0.5, %v403_v54 }
 0x9a6   :  { %v408_v59 = vmul.f32 %v406_v58, %v404_v55 }
 0xa14   :  { %v411_v56 = vpop.permute.xlu0 %410 }
 0xa15   :  { %v413_v57 = vmul.f32 %v411_v56, %v404_v55 }
 0xa17   :  { %415 = vrot.lane.b32.xlu2 %v413_v57, %s786_s20 }
 0xa71   :  { %v416_v60 = vpop.permute.xlu2 %415 }
 0xa72   :  { %v418_v61 = vadd.f32 %v416_v60, %v408_v59 }
 0xa74   :  { %766 = vtanh.f32 %v418_v61  ;;  %v465_v11 = vrot.slane %v418_v61, 6 }
 0xa7a   :  { %v767_v62 = vpop.eup %766 }
 0xa7b   :  { %421 = vrot.lane.b32.xlu1 %v767_v62, %s784_s6 }
 0xaed   :  { %v422_v63 = vpop.permute.xlu1 %421 }
 0xaee   :  { %v1015_v51 = vmul.f32 %v422_v63, %v404_v55 }
 0xaf0   :  { %v435_v0 = vrot.slane %v1015_v51, 6 }
 0xaf2   :  { %436 = vrot.lane.b32.xlu0 %v435_v0, %s786_s20 }
 0xb64   :  { %v437_v1 = vpop.permute.xlu0 %436 }
 0xb65   :  { %728 = vmatmul.msk.f32.vlgmr.msrb.gmra.mxu1 %vm249_vm3, %v437_v1 }
 0xbe2   :  { %v457_v4 = vpop.f32.mrf.mxu1 }
 0xbe3   :  { %v460_v5 = vadd.f32 %v457_v4, %v1021_v3 }
 0xbe5   :  { %768 = vtanh.f32 %v460_v5 }
 0xbeb   :  { %v769_v6 = vpop.eup %768 }
 0xbec   :  { %469 = vrot.lane.b32.xlu2 %v769_v6, %s784_s6  ;;  %v462_v7 = vadd.f32 1.0, %v769_v6 }
 0xbee   :  { %v463_v8 = vmul.f32 0.5, %v462_v7 }
 0xbf0   :  { %v467_v12 = vmul.f32 %v465_v11, %v463_v8  ;;  %v676_v11 = vld [vmem:[%s1111_s9] sm:$0xff] }
 0xc46   :  { %v470_v9 = vpop.permute.xlu2 %469 }
 0xc47   :  { %v472_v10 = vmul.f32 %v470_v9, %v463_v8  ;;  %v679_v9 = vld [vmem:[%s1111_s9 + $0x18] sm:$0xff] }
 0xc48   :  { %699 = vmatpush.msra.mxu1 %v679_v9 }
 0xc49   :  { %474 = vrot.lane.b32.xlu1 %v472_v10, %s786_s20  ;;  %v678_v10 = vld [vmem:[%s1111_s9 + $0x10] sm:$0xff] }
 0xc4a   :  { %700 = vmatpush.msra.mxu1 %v678_v10 }
 0xcbb   :  { %v475_v13 = vpop.permute.xlu1 %474 }
 0xcbc   :  { %v477_v14 = vadd.f32 %v475_v13, %v467_v12 }
 0xcbe   :  { %770 = vtanh.f32 %v477_v14  ;;  %v523_v26 = vrot.slane %v477_v14, 6 }
 0xcc4   :  { %v771_v49 = vpop.eup %770 }
 0xcc5   :  { %480 = vrot.lane.b32.xlu0 %v771_v49, %s784_s6 }
 0xd37   :  { %v481_v15 = vpop.permute.xlu0 %480 }
 0xd38   :  { %v483_v16 = vmul.f32 %v481_v15, %v463_v8  ;;  %v739_v15 = vld [vmem:[%s1110_s10] ss:$0 sm:$0xff] }
 0xd3a   :  { %485 = vrot.lane.b32.xlu2 %v483_v16, %s786_s20 }
 0xd94   :  { %v486_v17 = vpop.permute.xlu2 %485 }
 0xd95   :  { %488 = vst.msk [vmem:[%s1109_s11 + $0x8] sm:$0x3] %vm243_vm2, %v486_v17  ;;  %729 = vmatmul.msk.f32.vlgmr.msrb.gmra.mxu3 %vm249_vm3, %v486_v17 }
 0xe18   :  { %v512_v18 = vpop.f32.mrf.mxu3 }
 0xe19   :  { %v516_v19 = vrot.slane %v512_v18, 6 }
 0xe1b   :  { %v518_v20 = vadd.f32 %v516_v19, %v1021_v3 }
 0xe1d   :  { %772 = vtanh.f32 %v518_v20 }
 0xe23   :  { %v773_v21 = vpop.eup %772 }
 0xe24   :  { %527 = vrot.lane.b32.xlu1 %v773_v21, %s784_s6  ;;  %v520_v22 = vadd.f32 1.0, %v773_v21 }
 0xe26   :  { %v521_v23 = vmul.f32 0.5, %v520_v22 }
 0xe28   :  { %v525_v27 = vmul.f32 %v523_v26, %v521_v23 }
 0xe96   :  { %v528_v24 = vpop.permute.xlu1 %527 }
 0xe97   :  { %v530_v25 = vmul.f32 %v528_v24, %v521_v23 }
 0xe99   :  { %532 = vrot.lane.b32.xlu0 %v530_v25, %s786_s20 }
 0xf0b   :  { %v533_v29 = vpop.permute.xlu0 %532 }
 0xf0c   :  { %v535_v30 = vadd.f32 %v533_v29, %v525_v27 }
 0xf0e   :  { %774 = vtanh.f32 %v535_v30  ;;  %v584_v44 = vrot.slane %v535_v30, 6 }
 0xf14   :  { %v775_v31 = vpop.eup %774 }
 0xf15   :  { %538 = vrot.lane.b32.xlu2 %v775_v31, %s784_s6 }
 0xf6f   :  { %v539_v32 = vpop.permute.xlu2 %538 }
 0xf70   :  { %v541_v33 = vmul.f32 %v539_v32, %v521_v23 }
 0xf72   :  { %v551_v34 = vrot.slane %v541_v33, 2 }
 0xf74   :  { %552 = vrot.lane.b32.xlu1 %v551_v34, %s786_s20 }
 0xfe6   :  { %v553_v35 = vpop.permute.xlu1 %552 }
 0xfe7   :  { %730 = vmatmul.msk.f32.vlgmr.msrb.gmra.mxu2 %vm249_vm3, %v553_v35 }
0x106a   :  { %v573_v36 = vpop.f32.mrf.mxu2 }
0x106b   :  { %v577_v37 = vrot.slane %v573_v36, 4 }
0x106d   :  { %v579_v38 = vadd.f32 %v577_v37, %v1021_v3 }
0x106f   :  { %776 = vtanh.f32 %v579_v38 }
0x1075   :  { %v777_v39 = vpop.eup %776 }
0x1076   :  { %588 = vrot.lane.b32.xlu0 %v777_v39, %s784_s6  ;;  %v581_v40 = vadd.f32 1.0, %v777_v39 }
0x1078   :  { %v582_v41 = vmul.f32 0.5, %v581_v40 }
0x107a   :  { %v586_v46 = vmul.f32 %v584_v44, %v582_v41 }
0x10e8   :  { %v589_v42 = vpop.permute.xlu0 %588 }
0x10e9   :  { %v591_v43 = vmul.f32 %v589_v42, %v582_v41 }
0x10eb   :  { %593 = vrot.lane.b32.xlu2 %v591_v43, %s786_s20 }
0x1145   :  { %v594_v47 = vpop.permute.xlu2 %593 }
0x1146   :  { %v596_v48 = vadd.f32 %v594_v47, %v586_v46 }
0x1148   :  { %778 = vtanh.f32 %v596_v48  ;;  %v645_v0 = vrot.slane %v596_v48, 6 }
0x114e   :  { %v779_v50 = vpop.eup %778 }
0x114f   :  { %599 = vrot.lane.b32.xlu1 %v779_v50, %s784_s6 }
0x11c1   :  { %v600_v52 = vpop.permute.xlu1 %599 }
0x11c2   :  { %v602_v53 = vmul.f32 %v600_v52, %v582_v41 }
0x11c4   :  { %v612_v54 = vrot.slane %v602_v53, 4 }
0x11c6   :  { %613 = vrot.lane.b32.xlu0 %v612_v54, %s786_s20 }
0x1238   :  { %v614_v55 = vpop.permute.xlu0 %613 }
0x1239   :  { %731 = vmatmul.msk.f32.vlgmr.msra.gmra.mxu0 %vm249_vm3, %v614_v55 }
0x12b6   :  { %v634_v56 = vpop.f32.mrf.mxu0 }
0x12b7   :  { %v638_v57 = vrot.slane %v634_v56, 2 }
0x12b9   :  { %v640_v58 = vadd.f32 %v638_v57, %v1021_v3 }
0x12bb   :  { %780 = vtanh.f32 %v640_v58 }
0x12c1   :  { %v781_v59 = vpop.eup %780 }
0x12c2   :  { %649 = vrot.lane.b32.xlu2 %v781_v59, %s784_s6  ;;  %v642_v60 = vadd.f32 1.0, %v781_v59 }
0x12c4   :  { %v643_v61 = vmul.f32 0.5, %v642_v60 }
0x12c6   :  { %v647_v1 = vmul.f32 %v645_v0, %v643_v61 }
0x131c   :  { %v650_v62 = vpop.permute.xlu2 %649 }
0x131d   :  { %v652_v63 = vmul.f32 %v650_v62, %v643_v61 }
0x131f   :  { %654 = vrot.lane.b32.xlu1 %v652_v63, %s786_s20 }
0x1391   :  { %v655_v2 = vpop.permute.xlu1 %654 }
0x1392   :  { %v657_v4 = vadd.f32 %v655_v2, %v647_v1 }
0x1394   :  { %782 = vtanh.f32 %v657_v4  ;;  %671 = vrot.lane.b32.xlu1 %v657_v4, %s785_s8 }
0x139a   :  { %v783_v5 = vpop.eup %782 }
0x139b   :  { %660 = vrot.lane.b32.xlu0 %v783_v5, %s784_s6 }
0x139c   :  { %426 = vrot.lane.b32.xlu1 %v1015_v51, %s786_s20 }
0x13a3   :  { %302 = vrot.lane.b32.xlu0 %v997_v28, %s786_s20 }
0x13ab   :  { %543 = vrot.lane.b32.xlu0 %v541_v33, %s786_s20 }
0x1406   :  { %v672_v3 = vpop.permute.xlu1 %671 }
0x1407   :  { %674 = vst.msk [vmem:[#allocation2 - $0x4] sm:$0xc0] %vm429_vm4, %v672_v3 }
0x140d   :  { %v661_v6 = vpop.permute.xlu0 %660 }
0x140e   :  { %v663_v7 = vmul.f32 %v661_v6, %v643_v61  ;;  %v427_v8 = vpop.permute.xlu1 %426 }
0x140f   :  { %430 = vst.msk [vmem:[%s1109_s11] sm:$0xc0] %vm429_vm4, %v427_v8 }
0x1410   :  { %665 = vrot.lane.b32.xlu2 %v663_v7, %s786_s20 }
0x1415   :  { %v303_v51 = vpop.permute.xlu0 %302 }
0x1416   :  { %306 = vst.msk [vmem:[%s1109_s11] sm:$0xc] %vm305_vm5, %v303_v51 }
0x1418   :  { %364 = vrot.lane.b32.xlu2 %v1006_v45, %s786_s20  ;;  %v677_v45 = vld [vmem:[%s1111_s9 + $0x8] sm:$0xff] }
0x1419   :  { %701 = vmatpush.msra.mxu1 %v677_v45 }
0x141b   :  { %702 = vmatpush.msra.mxu1 %v676_v11 }
0x141d   :  { %v544_v28 = vpop.permute.xlu0 %543 }
0x141e   :  { %546 = vst.msk [vmem:[%s1109_s11 + $0x8] sm:$0xc] %vm305_vm5, %v544_v28 }
0x1420   :  { %604 = vrot.lane.b32.xlu2 %v602_v53, %s786_s20 }
0x146a   :  { %v666_v12 = vpop.permute.xlu2 %665 }
0x146b   :  { %668 = vst.msk [vmem:[%s1109_s11 + $0x8] sm:$0xc0] %vm429_vm4, %v666_v12 }
0x146c   :  { %669 = vst.msk [vmem:[#allocation2 - $0x6] sm:$0xc0] %vm429_vm4, %v666_v12 }
0x1472   :  { %v365_v13 = vpop.permute.xlu2 %364 }
0x1473   :  { %368 = vst.msk [vmem:[%s1109_s11] sm:$0x30] %vm367_vm6, %v365_v13  ;;  %v675_v14 = vld [vmem:[#allocation2] sm:$0xf] }
0x1474   :  { %732 = vmatmul.msk.f32.vlgmr.msra.gmra.mxu1 %vm249_vm3, %v675_v14 }
0x147a   :  { %v605_v49 = vpop.permute.xlu2 %604 }
0x147b   :  { %607 = vst.msk [vmem:[%s1109_s11 + $0x8] sm:$0x30] %vm367_vm6, %v605_v49 }
0x14f1   :  { %v704_v16 = vpop.f32.mrf.mxu1 }
0x14f2   :  { %v705_v17 = vadd.f32 %v739_v15, %v704_v16 }
0x14f4   :  { %708 = vst.msk [vmem:[%s1112_s12] sm:$0xf] %vm707_vm7, %v705_v17 }

</bundles_post_ra>
